<compile_context>
chip_gen: v6e
topology: v6e:2x2x1
jax: 0.10.0
libtpu: 0.0.40
codegen_flags: <defaults>
</compile_context>

<pallas_src>
import jax
import jax.numpy as jnp
from jax.experimental import pallas as pl
from jax.experimental.pallas import tpu as pltpu


def _bayesian_linear_kernel(x_ref, wmu_ref, wsig_ref, weps_ref,
                            bmu_ref, bsig_ref, beps_ref, o_ref, acc_ref):
    k = pl.program_id(1)

    @pl.when(k == 0)
    def _init():
        acc_ref[...] = jnp.zeros_like(acc_ref)

    # Sample this (tk, tn) weight tile on the VPU and feed the MXU directly
    # (no transpose), accumulating in f32.
    w = wmu_ref[...] + wsig_ref[...] * weps_ref[...]
    acc_ref[...] += jnp.dot(x_ref[...], w, preferred_element_type=jnp.float32)

    @pl.when(k == pl.num_programs(1) - 1)
    def _finalize():
        b = bmu_ref[...] + bsig_ref[...] * beps_ref[...]          # (1, tn)
        o_ref[...] = (acc_ref[...] + b).astype(o_ref.dtype)


def _round_up(v, m):
    return (v + m - 1) // m * m


def _pick_tile(padded_dim, max_tile=512, align=128):
    """Largest multiple of `align` that divides `padded_dim` and is <= max_tile."""
    best = align
    t = align
    while t <= min(padded_dim, max_tile):
        if padded_dim % t == 0:
            best = t
        t += align
    return best


def _pad2(a, rows, cols):
    pr, pc = rows - a.shape[0], cols - a.shape[1]
    if pr or pc:
        a = jnp.pad(a, ((0, pr), (0, pc)))
    return a


def bayesian_linear(x, weight_mu, weight_sigma, bias_mu, bias_sigma, key,
                    *, max_tile_n=512, max_tile_k=512):
    """y = x @ (weight_mu + weight_sigma*eps).T + (bias_mu + bias_sigma*eps_b)."""
    batch, in_features = x.shape
    out_features = weight_mu.shape[0]

    # Fresh reparameterization noise per forward (torch.randn_like semantics),
    # drawn directly in the transposed (in, out) layout.
    k_w, k_b = jax.random.split(key)
    weight_eps_t = jax.random.normal(k_w, (in_features, out_features), jnp.float32)
    bias_eps = jax.random.normal(k_b, (out_features,), jnp.float32)

    # One-time layout change: (out, in) -> (in, out) so the kernel does x @ w.
    wmu_t = weight_mu.T
    wsig_t = weight_sigma.T

    # Padded problem sizes: lanes (K, N) to multiples of 128, batch to 8 sublanes.
    bp = _round_up(max(batch, 8), 8)
    kp = _round_up(in_features, 128)
    np_ = _round_up(out_features, 128)
    tk = _pick_tile(kp, max_tile_k)
    tn = _pick_tile(np_, max_tile_n)

    x_p = _pad2(x, bp, kp)
    wmu_p = _pad2(wmu_t, kp, np_)
    wsig_p = _pad2(wsig_t, kp, np_)
    weps_p = _pad2(weight_eps_t, kp, np_)
    bmu_p = _pad2(bias_mu.reshape(1, out_features), 1, np_)
    bsig_p = _pad2(bias_sigma.reshape(1, out_features), 1, np_)
    beps_p = _pad2(bias_eps.reshape(1, out_features), 1, np_)

    grid = (np_ // tn, kp // tk)           # (n: parallel, k: reduction, innermost)

    w_spec = pl.BlockSpec((tk, tn), lambda n, k: (k, n))
    b_spec = pl.BlockSpec((1, tn), lambda n, k: (0, n))

    # Advisory cost + explicit VMEM budget (double-buffered inputs, resident out,
    # accumulator scratch), kept well under v7x's 64 MiB physical VMEM.
    flops = 2 * bp * kp * np_ + 2 * kp * np_ + 2 * np_
    bytes_accessed = 4 * (3 * kp * np_ + bp * kp * (np_ // tn) + bp * np_ + 3 * np_)
    step_in_bytes = 4 * (3 * tk * tn + bp * tk + 3 * tn)
    vmem_bytes = 2 * step_in_bytes + 3 * 4 * bp * tn
    vmem_limit = int(min(100 * 1024 * 1024, max(32 * 1024 * 1024, 2 * vmem_bytes)))

    out_p = pl.pallas_call(
        _bayesian_linear_kernel,
        out_shape=jax.ShapeDtypeStruct((bp, np_), x.dtype),
        grid_spec=pltpu.PrefetchScalarGridSpec(
            num_scalar_prefetch=0,
            grid=grid,
            in_specs=[
                pl.BlockSpec((bp, tk), lambda n, k: (0, k)),   # x
                w_spec, w_spec, w_spec,                        # weight mu / sigma / eps
                b_spec, b_spec, b_spec,                        # bias mu / sigma / eps
            ],
            out_specs=pl.BlockSpec((bp, tn), lambda n, k: (0, n)),
            scratch_shapes=[pltpu.VMEM((bp, tn), jnp.float32)],
        ),
        compiler_params=pltpu.CompilerParams(
            dimension_semantics=("parallel", "arbitrary"),
            vmem_limit_bytes=vmem_limit,
        ),
        cost_estimate=pl.CostEstimate(
            flops=int(flops), transcendentals=0, bytes_accessed=int(bytes_accessed)),
    )(x_p, wmu_p, wsig_p, weps_p, bmu_p, bsig_p, beps_p)

    return out_p[:batch, :out_features]


def _reference(x, wmu, wsig, bmu, bsig, noise_key):
    """Pure-JAX reference with the identical noise draw as the wrapper."""
    kw, kb = jax.random.split(noise_key)
    in_f, out_f = wmu.shape[1], wmu.shape[0]
    w_eps_t = jax.random.normal(kw, (in_f, out_f), jnp.float32)
    b_eps = jax.random.normal(kb, (out_f,), jnp.float32)
    w_t = wmu.T + wsig.T * w_eps_t
    b = bmu + bsig * b_eps
    return jnp.dot(x, w_t, precision=jax.lax.Precision.HIGHEST) + b


if __name__ == "__main__":
    key = jax.random.PRNGKey(0)
    k_x, k_wmu, k_wsig, k_bmu, k_bsig, k_noise, k_big = jax.random.split(key, 7)

    # --- Small shapes consistent with the module -----------------------------
    in_features, out_features, batch = 32, 16, 4
    weight_mu = jax.random.normal(k_wmu, (out_features, in_features), jnp.float32) * 0.1
    weight_sigma = jax.random.normal(k_wsig, (out_features, in_features), jnp.float32) * 0.1
    bias_mu = jax.random.normal(k_bmu, (out_features,), jnp.float32) * 0.1
    bias_sigma = jax.random.normal(k_bsig, (out_features,), jnp.float32) * 0.1
    x = jax.random.normal(k_x, (batch, in_features), jnp.float32)

    y = bayesian_linear(x, weight_mu, weight_sigma, bias_mu, bias_sigma, k_noise)
    jax.block_until_ready(y)

    y_ref = _reference(x, weight_mu, weight_sigma, bias_mu, bias_sigma, k_noise)
    assert y.shape == (batch, out_features)
    assert jnp.allclose(y, y_ref, atol=1e-4, rtol=1e-4), \
        float(jnp.max(jnp.abs(y - y_ref)))

    # --- Larger shapes exercising the multi-tile (2x2 grid) reduction path ----
    in_f2, out_f2, batch2 = 1024, 768, 12
    kk = jax.random.split(k_big, 6)
    wmu2 = jax.random.normal(kk[0], (out_f2, in_f2), jnp.float32) * 0.1
    wsig2 = jax.random.normal(kk[1], (out_f2, in_f2), jnp.float32) * 0.1
    bmu2 = jax.random.normal(kk[2], (out_f2,), jnp.float32) * 0.1
    bsig2 = jax.random.normal(kk[3], (out_f2,), jnp.float32) * 0.1
    x2 = jax.random.normal(kk[4], (batch2, in_f2), jnp.float32)

    y2 = bayesian_linear(x2, wmu2, wsig2, bmu2, bsig2, kk[5])
    jax.block_until_ready(y2)
    y2_ref = _reference(x2, wmu2, wsig2, bmu2, bsig2, kk[5])
    assert y2.shape == (batch2, out_f2)
    # Looser tolerance: partial-sum ordering / MXU pass differences over K=1024.
    assert jnp.allclose(y2, y2_ref, atol=2e-2, rtol=2e-2), \
        float(jnp.max(jnp.abs(y2 - y2_ref)))

    print("KERNEL_OK")
</pallas_src>

<mosaic_0001>
module attributes {stable_mosaic.version = 11 : i64} {
  func.func @_bayesian_linear_kernel(%arg0: i32, %arg1: i32, %arg2: memref<8x128xf32, #tpu.memory_space<vmem>>, %arg3: memref<128x128xf32, #tpu.memory_space<vmem>>, %arg4: memref<128x128xf32, #tpu.memory_space<vmem>>, %arg5: memref<128x128xf32, #tpu.memory_space<vmem>>, %arg6: memref<1x128xf32, #tpu.memory_space<vmem>>, %arg7: memref<1x128xf32, #tpu.memory_space<vmem>>, %arg8: memref<1x128xf32, #tpu.memory_space<vmem>>, %arg9: memref<8x128xf32, #tpu.memory_space<vmem>>, %arg10: memref<8x128xf32, #tpu.memory_space<vmem>>) attributes {dimension_semantics = [#tpu.dimension_semantics<parallel>, #tpu.dimension_semantics<arbitrary>], iteration_bounds = array<i64: 1, 1>, scalar_prefetch = 0 : i64, scratch_operands = 1 : i64, tpu.core_type = #tpu.core_type<tc>, window_params = [{transform_indices = @transform_0, window_bounds = array<i64: 8, 128>}, {transform_indices = @transform_1, window_bounds = array<i64: 128, 128>}, {transform_indices = @transform_2, window_bounds = array<i64: 128, 128>}, {transform_indices = @transform_3, window_bounds = array<i64: 128, 128>}, {transform_indices = @transform_4, window_bounds = array<i64: 1, 128>}, {transform_indices = @transform_5, window_bounds = array<i64: 1, 128>}, {transform_indices = @transform_6, window_bounds = array<i64: 1, 128>}, {transform_indices = @transform_7, window_bounds = array<i64: 8, 128>}]} {
    %c0_i32 = arith.constant 0 : i32
    %0 = arith.cmpi eq, %arg1, %c0_i32 : i32
    %1 = arith.extui %0 : i1 to i32
    %c0_i32_0 = arith.constant 0 : i32
    %2 = arith.cmpi ne, %1, %c0_i32_0 : i32
    scf.if %2 {
      %cst_14 = arith.constant 0.000000e+00 : f32
      %16 = vector.broadcast %cst_14 : f32 to vector<8x128xf32>
      %c0_15 = arith.constant 0 : index
      %c0_16 = arith.constant 0 : index
      %17 = vector.load %arg10[%c0_15, %c0_16] : memref<8x128xf32, #tpu.memory_space<vmem>>, vector<8x128xf32>
      tpu.vector_store %arg10[%c0_15, %c0_16], %16 {strides = array<i32>} : memref<8x128xf32, #tpu.memory_space<vmem>>, vector<8x128xf32>,
    } else {
    }
    %c0 = arith.constant 0 : index
    %c0_1 = arith.constant 0 : index
    %3 = vector.load %arg3[%c0, %c0_1] : memref<128x128xf32, #tpu.memory_space<vmem>>, vector<128x128xf32>
    %c0_2 = arith.constant 0 : index
    %c0_3 = arith.constant 0 : index
    %4 = vector.load %arg4[%c0_2, %c0_3] : memref<128x128xf32, #tpu.memory_space<vmem>>, vector<128x128xf32>
    %c0_4 = arith.constant 0 : index
    %c0_5 = arith.constant 0 : index
    %5 = vector.load %arg5[%c0_4, %c0_5] : memref<128x128xf32, #tpu.memory_space<vmem>>, vector<128x128xf32>
    %6 = arith.mulf %4, %5 : vector<128x128xf32>
    %7 = arith.addf %3, %6 : vector<128x128xf32>
    %c0_6 = arith.constant 0 : index
    %c0_7 = arith.constant 0 : index
    %8 = vector.load %arg10[%c0_6, %c0_7] : memref<8x128xf32, #tpu.memory_space<vmem>>, vector<8x128xf32>
    %c0_8 = arith.constant 0 : index
    %c0_9 = arith.constant 0 : index
    %9 = vector.load %arg2[%c0_8, %c0_9] : memref<8x128xf32, #tpu.memory_space<vmem>>, vector<8x128xf32>
    %cst = arith.constant dense<0.000000e+00> : vector<8x128xf32>
    %10 = tpu.matmul %9, %7, %cst {dimension_numbers = #tpu.dot_dimension_numbers<[1], [0], [0], [1], [0, 0, 1, 1], [], []>} : vector<8x128xf32>, vector<128x128xf32>, vector<8x128xf32> -> vector<8x128xf32>
    %11 = arith.addf %8, %10 : vector<8x128xf32>
    %c0_10 = arith.constant 0 : index
    %c0_11 = arith.constant 0 : index
    %12 = vector.load %arg10[%c0_10, %c0_11] : memref<8x128xf32, #tpu.memory_space<vmem>>, vector<8x128xf32>
    tpu.vector_store %arg10[%c0_10, %c0_11], %11 {strides = array<i32>} : memref<8x128xf32, #tpu.memory_space<vmem>>, vector<8x128xf32>,
    %c0_i32_12 = arith.constant 0 : i32
    %13 = arith.cmpi eq, %arg1, %c0_i32_12 : i32
    %14 = arith.extui %13 : i1 to i32
    %c0_i32_13 = arith.constant 0 : i32
    %15 = arith.cmpi ne, %14, %c0_i32_13 : i32
    scf.if %15 {
      %c0_14 = arith.constant 0 : index
      %c0_15 = arith.constant 0 : index
      %16 = vector.load %arg6[%c0_14, %c0_15] : memref<1x128xf32, #tpu.memory_space<vmem>>, vector<1x128xf32>
      %c0_16 = arith.constant 0 : index
      %c0_17 = arith.constant 0 : index
      %17 = vector.load %arg7[%c0_16, %c0_17] : memref<1x128xf32, #tpu.memory_space<vmem>>, vector<1x128xf32>
      %c0_18 = arith.constant 0 : index
      %c0_19 = arith.constant 0 : index
      %18 = vector.load %arg8[%c0_18, %c0_19] : memref<1x128xf32, #tpu.memory_space<vmem>>, vector<1x128xf32>
      %19 = arith.mulf %17, %18 : vector<1x128xf32>
      %20 = arith.addf %16, %19 : vector<1x128xf32>
      %c0_20 = arith.constant 0 : index
      %c0_21 = arith.constant 0 : index
      %21 = vector.load %arg10[%c0_20, %c0_21] : memref<8x128xf32, #tpu.memory_space<vmem>>, vector<8x128xf32>
      %22 = vector.broadcast %20 : vector<1x128xf32> to vector<8x128xf32>
      %23 = arith.addf %21, %22 : vector<8x128xf32>
      %c0_22 = arith.constant 0 : index
      %c0_23 = arith.constant 0 : index
      %24 = vector.load %arg9[%c0_22, %c0_23] : memref<8x128xf32, #tpu.memory_space<vmem>>, vector<8x128xf32>
      tpu.vector_store %arg9[%c0_22, %c0_23], %23 {strides = array<i32>} : memref<8x128xf32, #tpu.memory_space<vmem>>, vector<8x128xf32>,
    } else {
    }
    return
  }
  func.func @transform_0(%arg0: i32, %arg1: i32) -> (i32, i32) {
    %c0_i32 = arith.constant 0 : i32
    %c0_i32_0 = arith.constant 0 : i32
    return %c0_i32, %arg1 : i32, i32
  }
  func.func @transform_1(%arg0: i32, %arg1: i32) -> (i32, i32) {
    %c0_i32 = arith.constant 0 : i32
    return %arg1, %arg0 : i32, i32
  }
  func.func @transform_2(%arg0: i32, %arg1: i32) -> (i32, i32) {
    %c0_i32 = arith.constant 0 : i32
    return %arg1, %arg0 : i32, i32
  }
  func.func @transform_3(%arg0: i32, %arg1: i32) -> (i32, i32) {
    %c0_i32 = arith.constant 0 : i32
    return %arg1, %arg0 : i32, i32
  }
  func.func @transform_4(%arg0: i32, %arg1: i32) -> (i32, i32) {
    %c0_i32 = arith.constant 0 : i32
    %c0_i32_0 = arith.constant 0 : i32
    return %c0_i32, %arg0 : i32, i32
  }
  func.func @transform_5(%arg0: i32, %arg1: i32) -> (i32, i32) {
    %c0_i32 = arith.constant 0 : i32
    %c0_i32_0 = arith.constant 0 : i32
    return %c0_i32, %arg0 : i32, i32
  }
  func.func @transform_6(%arg0: i32, %arg1: i32) -> (i32, i32) {
    %c0_i32 = arith.constant 0 : i32
    %c0_i32_0 = arith.constant 0 : i32
    return %c0_i32, %arg0 : i32, i32
  }
  func.func @transform_7(%arg0: i32, %arg1: i32) -> (i32, i32) {
    %c0_i32 = arith.constant 0 : i32
    %c0_i32_0 = arith.constant 0 : i32
    return %c0_i32, %arg0 : i32, i32
  }
}

</mosaic_0001>

<bundles_post_ra>
// kernel: tpu_custom_call.1
= control target key start
LH: loop header
LB: loop body
LE: loop exit
PB: predicated region body
PF: predicated region fallthrough
CT: control target
= control target key end

     0   :  { %12 = vsyncpa [#allocation4], 0  ;;  %s541_s0 = inlined_call_operand.hbm [shape: f32[8,128], index: 0, kind: input, shape index: {}]   ;;  %s542_s1 = inlined_call_operand.hbm [shape: f32[128,128], index: 1, kind: input, shape index: {}]   ;;  %s543_s2 = inlined_call_operand.hbm [shape: f32[128,128], index: 2, kind: input, shape index: {}]   ;;  %s544_s3 = inlined_call_operand.hbm [shape: f32[128,128], index: 3, kind: input, shape index: {}]   ;;  %s545_s4 = inlined_call_operand.vmem [shape: f32[1,128], index: 4, kind: input, shape index: {}]   ;;  %s546_s5 = inlined_call_operand.vmem [shape: f32[1,128], index: 5, kind: input, shape index: {}]   ;;  %s547_s6 = inlined_call_operand.vmem [shape: f32[1,128], index: 6, kind: input, shape index: {}]   ;;  %s548_s7 = inlined_call_operand.hbm [shape: f32[8,128], index: 7, kind: output, shape index: {}]  }
   0x1   :  { %13 = vsyncpa [#allocation7], 0 }
   0x2   :  { %14 = vsyncpa [#allocation10], 0 }
   0x3   :  { %15 = vsyncpa [#allocation5], 0  ;;  %s442_s24 = smov [#allocation6]  }
   0x4   :  { %s31_s25 = sshll.u32 %s442_s24, 4  ;;  %s32_s25 = int_to_ptr.vmem [resolvable:$true] %s31_s25 }
   0x5   :  { %s342_s26 = scalar_lea.vmem %s32_s25, 2048  ;;  %p347_p1 = scmp.lt.s32.totalorder %s32_s25, %s32_s25 }
   0x6   :  { %p343_p0 = scmp.ne.s32.totalorder %s32_s25, %s342_s26  ;;  %p348_p2 = scmp.lt.s32.totalorder %s342_s26, %s342_s26 }
   0x8   :  { %p349_p3 = por %p348_p2, %p347_p1 }
   0xa   :  { %p350_p4 = pnand %p349_p3, %p343_p0 }
   0xc   :  { %353 = shalt.err (!%p350_p4)
}
   0xd   :  { %s443_s27 = smov 128   ;;  %s444_s28 = smov 8  }
   0xe   :  { %37 = dma.hbm_to_vmem [thread:$0]  %s542_s1, 2048, %s32_s25, [#allocation7], %s443_s27, %s443_s27, %s444_s28  }
   0xf   :  { %s445_s8 = smov [#allocation3]   ;;  %s446_s10 = smov [#allocation8]  }
  0x10   :  { %s22_s9 = sshll.u32 %s445_s8, 4  ;;  %s43_s11 = sshll.u32 %s446_s10, 4  ;;  %s23_s9 = int_to_ptr.vmem [resolvable:$true] %s22_s9  ;;  %s44_s11 = int_to_ptr.vmem [resolvable:$true] %s43_s11 }
  0x11   :  { %s362_s12 = scalar_lea.vmem %s23_s9, 128  ;;  %p367_p6 = scmp.lt.s32.totalorder %s23_s9, %s23_s9 }
  0x12   :  { %p363_p5 = scmp.ne.s32.totalorder %s23_s9, %s362_s12  ;;  %p368_p7 = scmp.lt.s32.totalorder %s362_s12, %s362_s12 }
  0x14   :  { %p369_p8 = por %p368_p7, %p367_p6 }
  0x16   :  { %p370_p9 = pnand %p369_p8, %p363_p5 }
  0x18   :  { %373 = shalt.err (!%p370_p9)
}
  0x19   :  { %25 = dma.hbm_to_vmem [thread:$0]  %s541_s0, 128, %s23_s9, [#allocation4]  }
  0x1a   :  { %s382_s15 = scalar_lea.vmem %s44_s11, 2048  ;;  %p387_p11 = scmp.lt.s32.totalorder %s44_s11, %s44_s11 }
  0x1b   :  { %p383_p10 = scmp.ne.s32.totalorder %s44_s11, %s382_s15  ;;  %p388_p12 = scmp.lt.s32.totalorder %s382_s15, %s382_s15 }
  0x1d   :  { %p389_p13 = por %p388_p12, %p387_p11 }
  0x1f   :  { %p390_p0 = pnand %p389_p13, %p383_p10 }
  0x21   :  { %393 = shalt.err (!%p390_p0)
}
  0x22   :  { %49 = dma.hbm_to_vmem [thread:$0]  %s543_s2, 2048, %s44_s11, [#allocation7], %s443_s27, %s443_s27, %s444_s28  }
  0x23   :  { %s447_s17 = smov [#allocation9]  }
  0x24   :  { %s55_s18 = sshll.u32 %s447_s17, 4  ;;  %s56_s18 = int_to_ptr.vmem [resolvable:$true] %s55_s18 }
  0x25   :  { %s402_s19 = scalar_lea.vmem %s56_s18, 2048  ;;  %p407_p2 = scmp.lt.s32.totalorder %s56_s18, %s56_s18 }
  0x26   :  { %p403_p1 = scmp.ne.s32.totalorder %s56_s18, %s402_s19  ;;  %p408_p3 = scmp.lt.s32.totalorder %s402_s19, %s402_s19 }
  0x28   :  { %p409_p4 = por %p408_p3, %p407_p2 }
  0x2a   :  { %p410_p5 = pnand %p409_p4, %p403_p1 }
  0x2c   :  { %413 = shalt.err (!%p410_p5)
}
  0x2d   :  { %61 = dma.hbm_to_vmem [thread:$0]  %s544_s3, 2048, %s56_s18, [#allocation10], %s443_s27, %s443_s27, %s444_s28  }
  0x2e   :  { %434 = dma.done.wait [#allocation4], 128  }
  0x2f   :  { %435 = vsyncadd [#allocation4], 4294967168 }
  0x30   :  { %436 = dma.done.wait [#allocation7], 4096  }
  0x31   :  { %437 = vsyncadd [#allocation7], 4294963200 }
  0x32   :  { %438 = dma.done.wait [#allocation10], 2048  }
  0x33   :  { %439 = vsyncadd [#allocation10], 4294965248  ;;  %v448_v0 = vmov 0.0   ;;  %vm449_vm0 = vmmov 0   ;;  %v100_v1 = vld [vmem:[#allocation6 + $0x78] sm:$0xff]  ;;  %v99_v5 = vld [vmem:[#allocation6 + $0x70] sm:$0xff] }
  0x34   :  { %290 = vmatprep.subr.mxu0 %v448_v0  ;;  %322 = vmatprep.mubr.msk.f32.mxu0 %vm449_vm0, %v448_v0  ;;  %v116_v2 = vld [vmem:[#allocation8 + $0x78] sm:$0xff]  ;;  %v115_v6 = vld [vmem:[#allocation8 + $0x70] sm:$0xff]  ;;  %v98_v9 = vld [vmem:[#allocation6 + $0x68] sm:$0xff]  ;;  %s450_s25 = smov [#allocation11]  }
  0x35   :  { %v132_v3 = vld [vmem:[#allocation9 + $0x78] sm:$0xff]  ;;  %v131_v7 = vld [vmem:[#allocation9 + $0x70] sm:$0xff]  ;;  %v114_v10 = vld [vmem:[#allocation8 + $0x68] sm:$0xff]  ;;  %s262_s26 = sshll.u32 %s450_s25, 4  ;;  %s263_s26 = int_to_ptr.vmem [resolvable:$true] %s262_s26 }
  0x36   :  { %v148_v4 = vmul.f32 %v132_v3, %v116_v2  ;;  %v147_v8 = vmul.f32 %v131_v7, %v115_v6  ;;  %v130_v11 = vld [vmem:[#allocation9 + $0x68] sm:$0xff]  ;;  %v113_v14 = vld [vmem:[#allocation8 + $0x60] sm:$0xff]  ;;  %v112_v19 = vld [vmem:[#allocation8 + $0x58] sm:$0xff]  ;;  %p419_p7 = scmp.lt.s32.totalorder %s263_s26, %s263_s26 }
  0x37   :  { %v146_v13 = vmul.f32 %v130_v11, %v114_v10  ;;  %v129_v15 = vld [vmem:[#allocation9 + $0x60] sm:$0xff]  ;;  %v128_v20 = vld [vmem:[#allocation9 + $0x58] sm:$0xff]  ;;  %v111_v23 = vld [vmem:[#allocation8 + $0x50] sm:$0xff] }
  0x38   :  { %v164_v12 = vadd.f32 %v148_v4, %v100_v1  ;;  %v163_v16 = vadd.f32 %v147_v8, %v99_v5  ;;  %v97_v17 = vld [vmem:[#allocation6 + $0x60] sm:$0xff]  ;;  %v145_v18 = vmul.f32 %v129_v15, %v113_v14  ;;  %v144_v22 = vmul.f32 %v128_v20, %v112_v19  ;;  %v127_v24 = vld [vmem:[#allocation9 + $0x50] sm:$0xff]  ;;  %v96_v25 = vld [vmem:[#allocation6 + $0x58] sm:$0xff] }
  0x39   :  { %v162_v21 = vadd.f32 %v146_v13, %v98_v9  ;;  %v110_v26 = vld [vmem:[#allocation8 + $0x48] sm:$0xff]  ;;  %v143_v29 = vmul.f32 %v127_v24, %v111_v23  ;;  %v95_v30 = vld [vmem:[#allocation6 + $0x50] sm:$0xff]  ;;  %v109_v31 = vld [vmem:[#allocation8 + $0x40] sm:$0xff]  ;;  %v249_v19 = vlaneseq }
  0x3a   :  { %291 = vmatpush3.msra.mxu0 %v164_v12  ;;  %v126_v27 = vld [vmem:[#allocation9 + $0x48] sm:$0xff]  ;;  %v161_v28 = vadd.f32 %v145_v18, %v97_v17  ;;  %v125_v32 = vld [vmem:[#allocation9 + $0x40] sm:$0xff]  ;;  %v160_v33 = vadd.f32 %v144_v22, %v96_v25  ;;  %v108_v36 = vld [vmem:[#allocation8 + $0x38] sm:$0xff] }
  0x3b   :  { %292 = vmatprep.subr.mxu0 %v448_v0  ;;  %v142_v34 = vmul.f32 %v126_v27, %v110_v26  ;;  %v94_v35 = vld [vmem:[#allocation6 + $0x48] sm:$0xff]  ;;  %v124_v37 = vld [vmem:[#allocation9 + $0x38] sm:$0xff]  ;;  %v159_v38 = vadd.f32 %v143_v29, %v95_v30  ;;  %v141_v39 = vmul.f32 %v125_v32, %v109_v31  ;;  %v93_v40 = vld [vmem:[#allocation6 + $0x40] sm:$0xff]  ;;  %v250_v23 = vshrl.u32 %v249_v19, 7 }
  0x3c   :  { %293 = vmatpush3.msra.mxu0 %v163_v16  ;;  %v107_v41 = vld [vmem:[#allocation8 + $0x30] sm:$0xff]  ;;  %v140_v44 = vmul.f32 %v124_v37, %v108_v36  ;;  %v92_v45 = vld [vmem:[#allocation6 + $0x38] sm:$0xff]  ;;  %v106_v46 = vld [vmem:[#allocation8 + $0x28] sm:$0xff] }
  0x3d   :  { %294 = vmatprep.subr.mxu0 %v448_v0  ;;  %v123_v42 = vld [vmem:[#allocation9 + $0x30] sm:$0xff]  ;;  %v158_v43 = vadd.f32 %v142_v34, %v94_v35  ;;  %v122_v47 = vld [vmem:[#allocation9 + $0x28] sm:$0xff]  ;;  %v157_v48 = vadd.f32 %v141_v39, %v93_v40  ;;  %v105_v51 = vld [vmem:[#allocation8 + $0x20] sm:$0xff]  ;;  %v251_v26 = vsub.s32 0, %v250_v23 }
  0x3e   :  { %295 = vmatpush3.msra.mxu0 %v162_v21  ;;  %v139_v49 = vmul.f32 %v123_v42, %v107_v41  ;;  %v91_v50 = vld [vmem:[#allocation6 + $0x30] sm:$0xff]  ;;  %v121_v52 = vld [vmem:[#allocation9 + $0x20] sm:$0xff]  ;;  %v156_v53 = vadd.f32 %v140_v44, %v92_v45  ;;  %v138_v54 = vmul.f32 %v122_v47, %v106_v46  ;;  %v90_v55 = vld [vmem:[#allocation6 + $0x28] sm:$0xff] }
  0x3f   :  { %296 = vmatprep.subr.mxu0 %v448_v0  ;;  %v104_v56 = vld [vmem:[#allocation8 + $0x18] sm:$0xff]  ;;  %v137_v59 = vmul.f32 %v121_v52, %v105_v51  ;;  %v89_v60 = vld [vmem:[#allocation6 + $0x20] sm:$0xff]  ;;  %v103_v61 = vld [vmem:[#allocation8 + $0x10] sm:$0xff] }
  0x40   :  { %297 = vmatpush3.msra.mxu0 %v161_v28  ;;  %v120_v57 = vld [vmem:[#allocation9 + $0x18] sm:$0xff]  ;;  %v155_v58 = vadd.f32 %v139_v49, %v91_v50  ;;  %v119_v62 = vld [vmem:[#allocation9 + $0x10] sm:$0xff]  ;;  %v154_v63 = vadd.f32 %v138_v54, %v90_v55  ;;  %v102_v3 = vld [vmem:[#allocation8 + $0x8] sm:$0xff] }
  0x41   :  { %298 = vmatprep.subr.mxu0 %v448_v0  ;;  %v136_v1 = vmul.f32 %v120_v57, %v104_v56  ;;  %v88_v2 = vld [vmem:[#allocation6 + $0x18] sm:$0xff]  ;;  %v118_v4 = vld [vmem:[#allocation9 + $0x8] sm:$0xff]  ;;  %v153_v5 = vadd.f32 %v137_v59, %v89_v60  ;;  %v135_v6 = vmul.f32 %v119_v62, %v103_v61  ;;  %v87_v7 = vld [vmem:[#allocation6 + $0x10] sm:$0xff] }
  0x42   :  { %299 = vmatpush3.msra.mxu0 %v160_v33  ;;  %v101_v8 = vld [vmem:[#allocation8] sm:$0xff]  ;;  %v134_v11 = vmul.f32 %v118_v4, %v102_v3  ;;  %v86_v12 = vld [vmem:[#allocation6 + $0x8] sm:$0xff]  ;;  %v166_v18 = vld [vmem:[#allocation3] sm:$0xff] }
  0x43   :  { %300 = vmatprep.subr.mxu0 %v448_v0  ;;  %v117_v9 = vld [vmem:[#allocation9] sm:$0xff]  ;;  %v152_v10 = vadd.f32 %v136_v1, %v88_v2  ;;  %v151_v13 = vadd.f32 %v135_v6, %v87_v7  ;;  %v243_v20 = vld [vmem:[%s546_s5] sm:$0x1]  ;;  %s414_s5 = scalar_lea.vmem %s263_s26, 128 }
  0x44   :  { %301 = vmatpush3.msra.mxu0 %v159_v38  ;;  %v133_v14 = vmul.f32 %v117_v9, %v101_v8  ;;  %v85_v15 = vld [vmem:[#allocation6] sm:$0xff]  ;;  %v150_v16 = vadd.f32 %v134_v11, %v86_v12  ;;  %v244_v21 = vld [vmem:[%s547_s6] sm:$0x1]  ;;  %p415_p6 = scmp.ne.s32.totalorder %s263_s26, %s414_s5  ;;  %p420_p8 = scmp.lt.s32.totalorder %s414_s5, %s414_s5 }
  0x45   :  { %302 = vmatprep.subr.mxu0 %v448_v0  ;;  %v245_v22 = vmul.f32 %v244_v21, %v243_v20  ;;  %v242_v24 = vld [vmem:[%s545_s4] sm:$0x1] }
  0x46   :  { %303 = vmatpush3.msra.mxu0 %v158_v43  ;;  %v149_v17 = vadd.f32 %v133_v14, %v85_v15  ;;  %p421_p9 = por %p420_p8, %p419_p7 }
  0x47   :  { %304 = vmatprep.subr.mxu0 %v448_v0  ;;  %v246_v25 = vadd.f32 %v245_v22, %v242_v24 }
  0x48   :  { %305 = vmatpush3.msra.mxu0 %v157_v48  ;;  %p422_p10 = pnand %p421_p9, %p415_p6 }
  0x49   :  { %306 = vmatprep.subr.mxu0 %v448_v0 }
  0x4a   :  { %307 = vmatpush3.msra.mxu0 %v156_v53 }
  0x4b   :  { %308 = vmatprep.subr.mxu0 %v448_v0 }
  0x4c   :  { %309 = vmatpush3.msra.mxu0 %v155_v58 }
  0x4d   :  { %310 = vmatprep.subr.mxu0 %v448_v0 }
  0x4e   :  { %311 = vmatpush3.msra.mxu0 %v154_v63 }
  0x4f   :  { %312 = vmatprep.subr.mxu0 %v448_v0 }
  0x50   :  { %313 = vmatpush3.msra.mxu0 %v153_v5 }
  0x51   :  { %314 = vmatprep.subr.mxu0 %v448_v0 }
  0x52   :  { %315 = vmatpush3.msra.mxu0 %v152_v10 }
  0x53   :  { %316 = vmatprep.subr.mxu0 %v448_v0 }
  0x54   :  { %317 = vmatpush3.msra.mxu0 %v151_v13 }
  0x55   :  { %318 = vmatprep.subr.mxu0 %v448_v0 }
  0x56   :  { %319 = vmatpush3.msra.mxu0 %v150_v16 }
  0x57   :  { %320 = vmatprep.subr.mxu0 %v448_v0  ;;  %v252_v0 = vrot.slane %v246_v25, %v251_v26 }
  0x58   :  { %321 = vmatpush3.msra.mxu0 %v149_v17 }
  0x59   :  { %323 = vmatmul.mubr.f32.vlgmr.msra.gmra.mxu0 %v166_v18 }
 0x119   :  { %v233_v27 = vpop.f32.mrf.mxu0 }
 0x11a   :  { %v254_v28 = vadd.f32 %v252_v0, %v233_v27 }
 0x11b   :  { %v324_v29 = vpop.f32.mrf.mxu0 }
 0x11c   :  { %255 = vst [vmem:[#allocation11] sm:$0xff] %v254_v28 }
 0x11d   :  { %425 = shalt.err (!%p422_p10)
}
 0x11e   :  { %265 = dma.vmem_to_hbm [thread:$0]  %s263_s26, 128, %s548_s7, [#allocation5]  }
 0x11f   :  { %440 = dma.done.wait [#allocation5], 128  }
 0x120   :  { %441 = vsyncadd [#allocation5], 4294967168 }
 0x121   :  { %269 = vsyncpa [#allocation4], 1 }
 0x122   :  { %270 = vsyncpa [#allocation7], 1 }
 0x123   :  { %271 = vsyncpa [#allocation10], 1 }
 0x124   :  { %272 = vsyncpa [#allocation5], 1 }

</bundles_post_ra>
